<compile_context>
chip_gen: v5e
topology: v5e:2x2
jax: 0.10.0
libtpu: 0.0.40
codegen_flags: <defaults>
</compile_context>

<pallas_src>
import functools

import jax
import jax.numpy as jnp
from jax.experimental import pallas as pl
from jax.experimental.pallas import tpu as pltpu

SMOOTH = 0.0001


def _dice_partial_kernel(x_ref, t_ref, out_ref,
                         inter_acc, psum_acc, tsum_acc, *, from_logits: bool):
    """x_ref: (C, th, W) native dtype, t_ref: (th, W) int32,
    out_ref: (C, 3) f32 partial sums [inter, psum, tsum] for this batch index."""
    j = pl.program_id(1)

    @pl.when(j == 0)
    def _():
        inter_acc[...] = jnp.zeros_like(inter_acc)
        psum_acc[...] = jnp.zeros_like(psum_acc)
        tsum_acc[...] = jnp.zeros_like(tsum_acc)

    x = x_ref[...].astype(jnp.float32)                      # (C, th, W)
    c = x.shape[0]

    # --- probabilities (softmax over the leading channel axis) -------------
    if from_logits:
        if c > 1:
            m = jnp.max(x, axis=0, keepdims=True)           # (1, th, W)
            e = jnp.exp(x - m)                              # (C, th, W)
            inv = pl.reciprocal(jnp.sum(e, axis=0, keepdims=True), approx=False)
            p = e * inv
        else:
            p = jax.nn.sigmoid(x)
    else:
        p = x

    # --- one-hot selection (no extra C x tile f32 multiply for `inter`) -----
    t = t_ref[...]                                          # (th, W) int32
    if c > 1:
        cls = jax.lax.broadcasted_iota(jnp.int32, p.shape, 0)   # (C, th, W)
        mask = cls == t[None, :, :]
        onehot = mask.astype(jnp.float32)
        inter_part = jnp.where(mask, p, 0.0)
    else:
        onehot = t[None, :, :].astype(jnp.float32)          # binary mask case
        inter_part = p * onehot

    # --- lane-resident partial accumulation (sublane reduce only) -----------
    inter_acc[...] += jnp.sum(inter_part, axis=1)           # (C, W)
    psum_acc[...] += jnp.sum(p, axis=1)                     # (C, W)
    tsum_acc[...] += jnp.sum(onehot, axis=1)                # (C, W)

    # --- finalize: single cross-lane reduce + tiny output store -------------
    @pl.when(j == pl.num_programs(1) - 1)
    def _():
        out_ref[:, 0:1] = jnp.sum(inter_acc[...], axis=1, keepdims=True)
        out_ref[:, 1:2] = jnp.sum(psum_acc[...], axis=1, keepdims=True)
        out_ref[:, 2:3] = jnp.sum(tsum_acc[...], axis=1, keepdims=True)


def _pick_tile_h(h, c, w, x_itemsize, budget_bytes=8 * 1024 * 1024):
    """Largest divisor of H that respects dtype sublane minima and keeps the
    double-buffered input blocks within ~budget_bytes of VMEM."""
    if x_itemsize >= 4:
        sub = 8
    elif x_itemsize == 2:
        sub = 16
    else:
        sub = 32
    cands = [d for d in range(1, h + 1)
             if h % d == 0 and (d == h or d % sub == 0)]
    cands.sort(reverse=True)

    def cost(d):  # double-buffered x block + target block
        return 2 * (c * d * w * x_itemsize + d * w * 4)

    for d in cands:
        if cost(d) <= budget_bytes:
            return d
    return cands[-1]


def soft_dice_loss(x, target, from_logits=True, reduction="mean"):
    """x: (N, C, H, W) float (any float dtype), target: (N, H, W) int.
    Returns scalar (or (C,) per-class losses for reduction='none')."""
    n, c, h, w = x.shape
    target = target.astype(jnp.int32)
    # TODO(synk): targets could be shipped as int8 (C < 128) to cut their HBM
    # traffic 4x; kept int32 to stay within safe tile minima for arbitrary th.

    th = _pick_tile_h(h, c, w, jnp.dtype(x.dtype).itemsize)
    grid = (n, h // th)

    partials = pl.pallas_call(
        functools.partial(_dice_partial_kernel, from_logits=from_logits),
        out_shape=jax.ShapeDtypeStruct((n, c, 3), jnp.float32),
        grid=grid,
        in_specs=[
            # original NCHW layout, no wrapper transpose / upcast
            pl.BlockSpec((pl.Squeezed(), c, th, w), lambda i, j: (i, 0, j, 0)),
            pl.BlockSpec((pl.Squeezed(), th, w), lambda i, j: (i, j, 0)),
        ],
        out_specs=pl.BlockSpec((pl.Squeezed(), c, 3), lambda i, j: (i, 0, 0)),
        scratch_shapes=[
            pltpu.VMEM((c, w), jnp.float32),   # inter accumulator
            pltpu.VMEM((c, w), jnp.float32),   # psum accumulator
            pltpu.VMEM((c, w), jnp.float32),   # tsum accumulator
        ],
        compiler_params=pltpu.CompilerParams(
            # batch axis parallel (v7x megacore), spatial reduction arbitrary
            dimension_semantics=("parallel", "arbitrary"),
            vmem_limit_bytes=32 * 1024 * 1024,   # safe on v5e/v6e/v7x
        ),
    )(x, target)

    sums = jnp.sum(partials, axis=0)            # (C, 3)
    inter, psum, tsum = sums[:, 0], sums[:, 1], sums[:, 2]
    dice = (2.0 * inter + SMOOTH) / (psum + tsum + SMOOTH)
    loss = 1.0 - dice
    if reduction == "sum":
        return loss.sum()
    if reduction == "none":
        return loss
    return loss.mean()


def _reference(x, target, from_logits=True, reduction="mean"):
    """Pure-JAX reference for a quick sanity check."""
    n, c, h, w = x.shape
    xp = jax.nn.softmax(x.astype(jnp.float32), axis=1) if (from_logits and c > 1) else (
        jax.nn.sigmoid(x.astype(jnp.float32)) if from_logits else x.astype(jnp.float32))
    onehot = jax.nn.one_hot(target, c, dtype=jnp.float32)          # (N,H,W,C)
    onehot = jnp.transpose(onehot, (0, 3, 1, 2))                   # (N,C,H,W)
    inter = jnp.sum(xp * onehot, axis=(0, 2, 3))
    card = jnp.sum(xp, axis=(0, 2, 3)) + jnp.sum(onehot, axis=(0, 2, 3))
    dice = (2.0 * inter + SMOOTH) / (card + SMOOTH)
    loss = 1.0 - dice
    if reduction == "sum":
        return loss.sum()
    if reduction == "none":
        return loss
    return loss.mean()


if __name__ == "__main__":
    key = jax.random.PRNGKey(0)
    kx, kt = jax.random.split(key)

    N, C, H, W = 2, 4, 16, 16
    x = jax.random.normal(kx, (N, C, H, W), dtype=jnp.float32)
    target = jax.random.randint(kt, (N, H, W), 0, C, dtype=jnp.int32)

    loss = soft_dice_loss(x, target, from_logits=True, reduction="mean")
    loss = jax.block_until_ready(loss)

    ref = _reference(x, target)
    assert jnp.allclose(loss, ref, atol=1e-5, rtol=1e-5), (loss, ref)

    print("KERNEL_OK")
</pallas_src>

<mosaic_0001>
module attributes {stable_mosaic.version = 11 : i64} {
  func.func @_dice_partial_kernel(%arg0: i32, %arg1: i32, %arg2: memref<1x4x16x16xf32, #tpu.memory_space<vmem>>, %arg3: memref<1x16x16xi32, #tpu.memory_space<vmem>>, %arg4: memref<1x4x3xf32, #tpu.memory_space<vmem>>, %arg5: memref<4x16xf32, #tpu.memory_space<vmem>>, %arg6: memref<4x16xf32, #tpu.memory_space<vmem>>, %arg7: memref<4x16xf32, #tpu.memory_space<vmem>>) attributes {dimension_semantics = [#tpu.dimension_semantics<parallel>, #tpu.dimension_semantics<arbitrary>], iteration_bounds = array<i64: 2, 1>, scalar_prefetch = 0 : i64, scratch_operands = 3 : i64, tpu.core_type = #tpu.core_type<tc>, window_params = [{transform_indices = @transform_0, window_bounds = array<i64: 1, 4, 16, 16>}, {transform_indices = @transform_1, window_bounds = array<i64: 1, 16, 16>}, {transform_indices = @transform_2, window_bounds = array<i64: 1, 4, 3>}]} {
    %c0_i32 = arith.constant 0 : i32
    %0 = arith.cmpi eq, %arg1, %c0_i32 : i32
    %1 = arith.extui %0 : i1 to i32
    %c0_i32_0 = arith.constant 0 : i32
    %2 = arith.cmpi ne, %1, %c0_i32_0 : i32
    scf.if %2 {
      %cst_26 = arith.constant 0.000000e+00 : f32
      %40 = vector.broadcast %cst_26 : f32 to vector<4x16xf32>
      %c0_27 = arith.constant 0 : index
      %c0_28 = arith.constant 0 : index
      %41 = vector.load %arg5[%c0_27, %c0_28] : memref<4x16xf32, #tpu.memory_space<vmem>>, vector<4x16xf32>
      tpu.vector_store %arg5[%c0_27, %c0_28], %40 {strides = array<i32>} : memref<4x16xf32, #tpu.memory_space<vmem>>, vector<4x16xf32>,
      %cst_29 = arith.constant 0.000000e+00 : f32
      %42 = vector.broadcast %cst_29 : f32 to vector<4x16xf32>
      %c0_30 = arith.constant 0 : index
      %c0_31 = arith.constant 0 : index
      %43 = vector.load %arg6[%c0_30, %c0_31] : memref<4x16xf32, #tpu.memory_space<vmem>>, vector<4x16xf32>
      tpu.vector_store %arg6[%c0_30, %c0_31], %42 {strides = array<i32>} : memref<4x16xf32, #tpu.memory_space<vmem>>, vector<4x16xf32>,
      %cst_32 = arith.constant 0.000000e+00 : f32
      %44 = vector.broadcast %cst_32 : f32 to vector<4x16xf32>
      %c0_33 = arith.constant 0 : index
      %c0_34 = arith.constant 0 : index
      %45 = vector.load %arg7[%c0_33, %c0_34] : memref<4x16xf32, #tpu.memory_space<vmem>>, vector<4x16xf32>
      tpu.vector_store %arg7[%c0_33, %c0_34], %44 {strides = array<i32>} : memref<4x16xf32, #tpu.memory_space<vmem>>, vector<4x16xf32>,
    } else {
    }
    %c0 = arith.constant 0 : index
    %c0_1 = arith.constant 0 : index
    %c0_2 = arith.constant 0 : index
    %c0_3 = arith.constant 0 : index
    %3 = vector.load %arg2[%c0, %c0_1, %c0_2, %c0_3] : memref<1x4x16x16xf32, #tpu.memory_space<vmem>>, vector<1x4x16x16xf32>
    %4 = vector.shape_cast %3 : vector<1x4x16x16xf32> to vector<4x16x16xf32>
    %cst = arith.constant dense<0xFF800000> : vector<16x16xf32>
    %5 = vector.multi_reduction <maximumf>, %4, %cst [0] : vector<4x16x16xf32> to vector<16x16xf32>
    %6 = vector.shape_cast %5 : vector<16x16xf32> to vector<1x16x16xf32>
    %7 = vector.broadcast %6 : vector<1x16x16xf32> to vector<4x16x16xf32>
    %8 = arith.subf %4, %7 : vector<4x16x16xf32>
    %9 = math.exp %8 : vector<4x16x16xf32>
    %cst_4 = arith.constant dense<0.000000e+00> : vector<16x16xf32>
    %10 = vector.multi_reduction <add>, %9, %cst_4 [0] : vector<4x16x16xf32> to vector<16x16xf32>
    %11 = vector.shape_cast %10 : vector<16x16xf32> to vector<1x16x16xf32>
    %12 = tpu.reciprocal %11 : vector<1x16x16xf32> -> vector<1x16x16xf32>
    %13 = vector.broadcast %12 : vector<1x16x16xf32> to vector<4x16x16xf32>
    %14 = arith.mulf %9, %13 : vector<4x16x16xf32>
    %c0_5 = arith.constant 0 : index
    %c0_6 = arith.constant 0 : index
    %c0_7 = arith.constant 0 : index
    %15 = vector.load %arg3[%c0_5, %c0_6, %c0_7] : memref<1x16x16xi32, #tpu.memory_space<vmem>>, vector<1x16x16xi32>
    %16 = vector.shape_cast %15 : vector<1x16x16xi32> to vector<16x16xi32>
    %17 = tpu.iota {dimensions = array<i32: 0>} : vector<4x16x16xi32>
    %18 = vector.shape_cast %16 : vector<16x16xi32> to vector<1x16x16xi32>
    %19 = vector.broadcast %18 : vector<1x16x16xi32> to vector<4x16x16xi32>
    %20 = arith.cmpi eq, %17, %19 : vector<4x16x16xi32>
    %21 = arith.extui %20 : vector<4x16x16xi1> to vector<4x16x16xi32>
    %22 = arith.sitofp %21 : vector<4x16x16xi32> to vector<4x16x16xf32>
    %cst_8 = arith.constant 0.000000e+00 : f32
    %23 = vector.broadcast %cst_8 : f32 to vector<4x16x16xf32>
    %24 = arith.select %20, %14, %23 : vector<4x16x16xi1>, vector<4x16x16xf32>
    %c0_9 = arith.constant 0 : index
    %c0_10 = arith.constant 0 : index
    %25 = vector.load %arg5[%c0_9, %c0_10] : memref<4x16xf32, #tpu.memory_space<vmem>>, vector<4x16xf32>
    %cst_11 = arith.constant dense<0.000000e+00> : vector<4x16xf32>
    %26 = vector.multi_reduction <add>, %24, %cst_11 [1] : vector<4x16x16xf32> to vector<4x16xf32>
    %27 = arith.addf %25, %26 : vector<4x16xf32>
    %c0_12 = arith.constant 0 : index
    %c0_13 = arith.constant 0 : index
    %28 = vector.load %arg5[%c0_12, %c0_13] : memref<4x16xf32, #tpu.memory_space<vmem>>, vector<4x16xf32>
    tpu.vector_store %arg5[%c0_12, %c0_13], %27 {strides = array<i32>} : memref<4x16xf32, #tpu.memory_space<vmem>>, vector<4x16xf32>,
    %c0_14 = arith.constant 0 : index
    %c0_15 = arith.constant 0 : index
    %29 = vector.load %arg6[%c0_14, %c0_15] : memref<4x16xf32, #tpu.memory_space<vmem>>, vector<4x16xf32>
    %cst_16 = arith.constant dense<0.000000e+00> : vector<4x16xf32>
    %30 = vector.multi_reduction <add>, %14, %cst_16 [1] : vector<4x16x16xf32> to vector<4x16xf32>
    %31 = arith.addf %29, %30 : vector<4x16xf32>
    %c0_17 = arith.constant 0 : index
    %c0_18 = arith.constant 0 : index
    %32 = vector.load %arg6[%c0_17, %c0_18] : memref<4x16xf32, #tpu.memory_space<vmem>>, vector<4x16xf32>
    tpu.vector_store %arg6[%c0_17, %c0_18], %31 {strides = array<i32>} : memref<4x16xf32, #tpu.memory_space<vmem>>, vector<4x16xf32>,
    %c0_19 = arith.constant 0 : index
    %c0_20 = arith.constant 0 : index
    %33 = vector.load %arg7[%c0_19, %c0_20] : memref<4x16xf32, #tpu.memory_space<vmem>>, vector<4x16xf32>
    %cst_21 = arith.constant dense<0.000000e+00> : vector<4x16xf32>
    %34 = vector.multi_reduction <add>, %22, %cst_21 [1] : vector<4x16x16xf32> to vector<4x16xf32>
    %35 = arith.addf %33, %34 : vector<4x16xf32>
    %c0_22 = arith.constant 0 : index
    %c0_23 = arith.constant 0 : index
    %36 = vector.load %arg7[%c0_22, %c0_23] : memref<4x16xf32, #tpu.memory_space<vmem>>, vector<4x16xf32>
    tpu.vector_store %arg7[%c0_22, %c0_23], %35 {strides = array<i32>} : memref<4x16xf32, #tpu.memory_space<vmem>>, vector<4x16xf32>,
    %c0_i32_24 = arith.constant 0 : i32
    %37 = arith.cmpi eq, %arg1, %c0_i32_24 : i32
    %38 = arith.extui %37 : i1 to i32
    %c0_i32_25 = arith.constant 0 : i32
    %39 = arith.cmpi ne, %38, %c0_i32_25 : i32
    scf.if %39 {
      %c0_26 = arith.constant 0 : index
      %c0_27 = arith.constant 0 : index
      %40 = vector.load %arg5[%c0_26, %c0_27] : memref<4x16xf32, #tpu.memory_space<vmem>>, vector<4x16xf32>
      %cst_28 = arith.constant dense<0.000000e+00> : vector<4xf32>
      %41 = vector.multi_reduction <add>, %40, %cst_28 [1] : vector<4x16xf32> to vector<4xf32>
      %42 = vector.shape_cast %41 : vector<4xf32> to vector<4x1xf32>
      %c0_29 = arith.constant 0 : index
      %c0_30 = arith.constant 0 : index
      %c0_31 = arith.constant 0 : index
      %43 = vector.load %arg4[%c0_29, %c0_30, %c0_31] : memref<1x4x3xf32, #tpu.memory_space<vmem>>, vector<1x4x1xf32>
      %44 = vector.shape_cast %43 : vector<1x4x1xf32> to vector<4x1xf32>
      %45 = vector.shape_cast %42 : vector<4x1xf32> to vector<1x4x1xf32>
      tpu.vector_store %arg4[%c0_29, %c0_30, %c0_31], %45 {strides = array<i32>} : memref<1x4x3xf32, #tpu.memory_space<vmem>>, vector<1x4x1xf32>,
      %c0_32 = arith.constant 0 : index
      %c0_33 = arith.constant 0 : index
      %46 = vector.load %arg6[%c0_32, %c0_33] : memref<4x16xf32, #tpu.memory_space<vmem>>, vector<4x16xf32>
      %cst_34 = arith.constant dense<0.000000e+00> : vector<4xf32>
      %47 = vector.multi_reduction <add>, %46, %cst_34 [1] : vector<4x16xf32> to vector<4xf32>
      %48 = vector.shape_cast %47 : vector<4xf32> to vector<4x1xf32>
      %c0_35 = arith.constant 0 : index
      %c0_36 = arith.constant 0 : index
      %c1 = arith.constant 1 : index
      %49 = vector.load %arg4[%c0_35, %c0_36, %c1] : memref<1x4x3xf32, #tpu.memory_space<vmem>>, vector<1x4x1xf32>
      %50 = vector.shape_cast %49 : vector<1x4x1xf32> to vector<4x1xf32>
      %51 = vector.shape_cast %48 : vector<4x1xf32> to vector<1x4x1xf32>
      tpu.vector_store %arg4[%c0_35, %c0_36, %c1], %51 {strides = array<i32>} : memref<1x4x3xf32, #tpu.memory_space<vmem>>, vector<1x4x1xf32>,
      %c0_37 = arith.constant 0 : index
      %c0_38 = arith.constant 0 : index
      %52 = vector.load %arg7[%c0_37, %c0_38] : memref<4x16xf32, #tpu.memory_space<vmem>>, vector<4x16xf32>
      %cst_39 = arith.constant dense<0.000000e+00> : vector<4xf32>
      %53 = vector.multi_reduction <add>, %52, %cst_39 [1] : vector<4x16xf32> to vector<4xf32>
      %54 = vector.shape_cast %53 : vector<4xf32> to vector<4x1xf32>
      %c0_40 = arith.constant 0 : index
      %c0_41 = arith.constant 0 : index
      %c2 = arith.constant 2 : index
      %55 = vector.load %arg4[%c0_40, %c0_41, %c2] : memref<1x4x3xf32, #tpu.memory_space<vmem>>, vector<1x4x1xf32>
      %56 = vector.shape_cast %55 : vector<1x4x1xf32> to vector<4x1xf32>
      %57 = vector.shape_cast %54 : vector<4x1xf32> to vector<1x4x1xf32>
      tpu.vector_store %arg4[%c0_40, %c0_41, %c2], %57 {strides = array<i32>} : memref<1x4x3xf32, #tpu.memory_space<vmem>>, vector<1x4x1xf32>,
    } else {
    }
    return
  }
  func.func @transform_0(%arg0: i32, %arg1: i32) -> (i32, i32, i32, i32) {
    %c0_i32 = arith.constant 0 : i32
    %c0_i32_0 = arith.constant 0 : i32
    %c0_i32_1 = arith.constant 0 : i32
    return %arg0, %c0_i32, %arg1, %c0_i32_0 : i32, i32, i32, i32
  }
  func.func @transform_1(%arg0: i32, %arg1: i32) -> (i32, i32, i32) {
    %c0_i32 = arith.constant 0 : i32
    %c0_i32_0 = arith.constant 0 : i32
    return %arg0, %arg1, %c0_i32 : i32, i32, i32
  }
  func.func @transform_2(%arg0: i32, %arg1: i32) -> (i32, i32, i32) {
    %c0_i32 = arith.constant 0 : i32
    %c0_i32_0 = arith.constant 0 : i32
    %c0_i32_1 = arith.constant 0 : i32
    return %arg0, %c0_i32, %c0_i32_0 : i32, i32, i32
  }
}

</mosaic_0001>

<bundles_post_ra>
// kernel: tpu_custom_call.1
= control target key start
LH: loop header
LB: loop body
LE: loop exit
PB: predicated region body
PF: predicated region fallthrough
CT: control target
= control target key end

     0   :  { %7 = vsyncpa [#allocation6], 0  ;;  %s1185_s0 = inlined_call_operand.hbm [shape: f32[2,4,16,16], index: 0, kind: input, shape index: {}]   ;;  %s1186_s1 = inlined_call_operand.hbm [shape: s32[2,16,16], index: 1, kind: input, shape index: {}]   ;;  %s1187_s2 = inlined_call_operand.vmem [shape: f32[2,4,3], index: 2, kind: output, shape index: {}]  }
   0x1   :  { %9 = vsyncpa [#allocation6 + $0x1], 0 }
   0x2   :  { %10 = vsyncpa [#allocation8], 0 }
   0x3   :  { %12 = vsyncpa [#allocation8 + $0x1], 0  ;;  %s878_s9 = smov 0   ;;  %s880_s10 = smov 0  }
   0x4   :  { %s882_s11 = smov 0   ;;  %s884_s12 = smov 0  }
   0x5   :  { %s886_s13 = smov 0   ;;  %s888_s14 = smov 0  }
   0x6 LB: > { %s635_s15 = sadd.s32 4294967295, %s858_s14   ;;  %s30_s16 = sadd.s32 1, %s854_s13  ;;  %s858_s14 = sphi %s888_s14, %s18_s14   ;;  %s854_s13 = sphi %s886_s13, %s1208_s13   ;;  %s850_s12 = sphi %s884_s12, %s1207_s12   ;;  %s846_s11 = sphi %s882_s11, %s1206_s11   ;;  %s842_s10 = sphi %s880_s10, %s1205_s10   ;;  %s838_s9 = sphi %s878_s9, %s1204_s9  }
   0x7   : > { %p32_p0 = scmp.ge.s32.totalorder %s30_s16, 2  ;;  %s39_s17 = sadd.s32 1, %s846_s11 }
   0x8   : > { %p46_p1 = scmp.ne.s32.totalorder %s846_s11, %s842_s10  ;;  %p47_p2 = scmp.eq.s32.totalorder %s858_s14, 0 }
   0x9   : > { %s1210_s16 = smov (%p32_p0, %s30_s16), 0  ;;  %p52_p4 = scmp.ne.s32.totalorder %s842_s10, %s838_s9 }
   0xa   : > { %p914_p3 = por %p47_p2, %p46_p1  ;;  %s34_s19 = ssub.s32 %s854_s13, %s1210_s16 }
   0xb   : > { %p53_p5 = scmp.eq.s32.totalorder %s635_s15, 0  ;;  %p37_p6 = scmp.eq.s32.totalorder %s34_s19, 0 }
   0xc   : > { %p672_p8 = scmp.lt.s32.totalorder %s858_s14, 2  ;;  %s930_s22 = sand.u32 1, %s846_s11  }
   0xd   : > { %p921_p7 = por %p53_p5, %p52_p4  ;;  %s659_s23 = sshll.u32 %s854_s13, 6 }
   0xe   : > { %s927_s21 = scalar_select %p37_p6, %s846_s11, %s39_s17  }
   0xf   : > { %s639_s24 = sshll.u32 %s930_s22, 6  ;;  %s141_s27 = scalar_lea.hbm %s1185_s0, %s659_s23 }
  0x10   : > { %s142_s28 = sshll.u32 %s141_s27, 4  ;;  %s134_s29 = scalar_lea.vmem [#allocation5], %s639_s24  ;;  %s143_s28 = int_to_ptr.hbm [resolvable:$true] %s142_s28 }
  0x11   : > { %s144_s30 = sshll.u32 %s134_s29, 4  ;;  %p939_p9 = pnand %p672_p8, %p914_p3  ;;  %s145_s30 = int_to_ptr.vmem [resolvable:$true] %s144_s30 }
  0x12   : > { %p645_p10 = scmp.ge.s32.totalorder %s858_s14, 1  ;;  %p176_p11 = scmp.lt.s32.totalorder %s858_s14, 3 }
  0x13   : > { %s131_s4 = scalar_lea.sflag [#allocation6], %s930_s22  ;;  %s860_s5 = smov 128  }
  0x14   : > { %s861_s6 = smov 8   ;;  %p177_p12 = pnand %p645_p10, %p176_p11 }
  0x15   : > { %668 = dma.hbm_to_vmem [thread:$0]  (!%p939_p9), %s143_s28, 1024, %s145_s30, %s131_s4, %s860_s5, %s860_s5, %s861_s6  }
  0x16   : > { %s642_s7 = sshll.u32 %s930_s22, 4  ;;  %s660_s8 = sshll.u32 %s854_s13, 4 }
  0x17   : > { %s165_s17 = scalar_lea.hbm %s1186_s1, %s660_s8  ;;  %s158_s19 = scalar_lea.vmem [#allocation7], %s642_s7 }
  0x18   : > { %s166_s18 = sshll.u32 %s165_s17, 4  ;;  %s168_s23 = sshll.u32 %s158_s19, 4  ;;  %s167_s18 = int_to_ptr.hbm [resolvable:$true] %s166_s18  ;;  %s169_s23 = int_to_ptr.vmem [resolvable:$true] %s168_s23 }
  0x19   : > { %s155_s24 = scalar_lea.sflag [#allocation8], %s930_s22  ;;  %180 = sbr.rel (%p177_p12) target bundleno = 240 (0xf0), region = 28 }
  0x1a   : > { %671 = dma.hbm_to_vmem [thread:$0]  (!%p939_p9), %s167_s18, 256, %s169_s23, %s155_s24, %s860_s5, %s860_s5, %s861_s6  }
  0x1b   : > { %s182_s25 = sand.u32 (!%p177_p12), 1, %s842_s10  }
  0x1c   : > { %s646_s26 = sshll.u32 (!%p177_p12), %s182_s25, 6  ;;  %s183_s27 = scalar_lea.sflag (!%p177_p12), [#allocation6], %s182_s25 }
  0x1d   : > { %s186_s28 = scalar_lea.vmem (!%p177_p12), [#allocation5], %s646_s26 }
  0x1e   : > { %829 = dma.done.wait (%p921_p7), %s183_s27, 1024  }
  0x1f   : > { %831 = vsyncadd (%p921_p7), %s183_s27, 4294966272  ;;  %s647_s29 = sshll.u32 %s182_s25, 4  ;;  %s193_s30 = scalar_lea.sflag [#allocation8], %s182_s25 }
  0x20   : > { %s961_s4 = scalar_lea.vmem [#allocation7], %s647_s29 }
  0x21   : > { %833 = dma.done.wait (%p921_p7), %s193_s30, 256  }
  0x22   : > { %835 = vsyncadd (%p921_p7), %s193_s30, 4294967040  ;;  %vm1188_vm0 = vcmask 125952   ;;  %v862_v0 = vmov 0.0   ;;  %vm244_vm1 = vcmask 130048   ;;  %v236_v1 = vld [vmem:[%s186_s28] sm:$0xff]  ;;  %v237_v2 = vld [vmem:[%s186_s28 + $0x8] sm:$0xff] }
  0x23   : > { %233 = vst.msk [vmem:[#allocation2] sm:$0xf] %vm1188_vm0, %v862_v0  ;;  %v238_v3 = vld [vmem:[%s186_s28 + $0x10] sm:$0xff]  ;;  %v239_v4 = vld [vmem:[%s186_s28 + $0x18] sm:$0xff]  ;;  %v240_v5 = vld [vmem:[%s186_s28 + $0x20] sm:$0xff]  ;;  %v245_v7 = vsel %vm244_vm1, %v236_v1, -inf }
  0x24   : > { %234 = vst.msk [vmem:[#allocation3] sm:$0xf] %vm1188_vm0, %v862_v0  ;;  %v241_v6 = vld [vmem:[%s186_s28 + $0x28] sm:$0xff]  ;;  %v246_v8 = vsel %vm244_vm1, %v238_v3, -inf  ;;  %v252_v9 = vsel %vm244_vm1, %v237_v2, -inf  ;;  %v242_v10 = vld [vmem:[%s186_s28 + $0x30] sm:$0xff] }
  0x25   : > { %235 = vst.msk [vmem:[#allocation4] sm:$0xf] %vm1188_vm0, %v862_v0  ;;  %v243_v11 = vld [vmem:[%s186_s28 + $0x38] sm:$0xff]  ;;  %v247_v12 = vsel %vm244_vm1, %v240_v5, -inf  ;;  %v253_v13 = vsel %vm244_vm1, %v239_v4, -inf  ;;  %v254_v14 = vsel %vm244_vm1, %v241_v6, -inf }
  0x26   : > { %v248_v15 = vmax.f32 %v245_v7, %v247_v12  ;;  %v249_v16 = vsel %vm244_vm1, %v242_v10, -inf  ;;  %v255_v17 = vmax.f32 %v252_v9, %v254_v14  ;;  %v256_v18 = vsel %vm244_vm1, %v243_v11, -inf  ;;  %v1004_v52 = vld [vmem:[%s961_s4] sm:$0xff]  ;;  %v1011_v56 = vld [vmem:[%s961_s4 + $0x8] sm:$0xff]  ;;  %p224_p13 = scmp.lt.s32.totalorder %s850_s12, 1 }
  0x27   : > { %v250_v19 = vmax.f32 %v246_v8, %v249_v16  ;;  %v257_v20 = vmax.f32 %v253_v13, %v256_v18  ;;  %vm335_vm2 = vcmp.eq.s32.totalorder %v1004_v52, 0  ;;  %vm336_vm3 = vcmp.eq.s32.totalorder %v1011_v56, 0 }
  0x28   : > { %vm337_vm4 = vcmp.eq.s32.totalorder %v1004_v52, 1  ;;  %vm338_vm5 = vcmp.eq.s32.totalorder %v1011_v56, 1  ;;  %vm339_vm6 = vcmp.eq.s32.totalorder %v1004_v52, 2  ;;  %vm340_vm7 = vcmp.eq.s32.totalorder %v1011_v56, 2  ;;  %s1212_s12 = smov (!%p224_p13, %s850_s12), 1 }
  0x29   : > { %v251_v21 = vmax.f32 %v248_v15, %v250_v19  ;;  %v258_v22 = vmax.f32 %v255_v17, %v257_v20  ;;  %v649_v63 = vsel %vm335_vm2, 1.0, %v862_v0  ;;  %vm341_vm9 = vcmp.eq.s32.totalorder %v1004_v52, 3  ;;  %s648_s20 = sshll.u32 %s1212_s12, 2 }
  0x2a   : > { %vm342_vm10 = vcmp.eq.s32.totalorder %v1011_v56, 3  ;;  %v466_v8 = vsel %vm244_vm1, %v649_v63, 0.0  ;;  %s227_s5 = scalar_lea.vmem %s1187_s2, %s648_s20 }
  0x2b   : > { %v259_v23 = vsub.f32 %v236_v1, %v251_v21  ;;  %v260_v24 = vsub.f32 %v237_v2, %v258_v22  ;;  %v261_v25 = vsub.f32 %v238_v3, %v251_v21  ;;  %v262_v26 = vsub.f32 %v239_v4, %v258_v22 }
  0x2c   : > { %v263_v27 = vsub.f32 %v240_v5, %v251_v21  ;;  %v264_v28 = vsub.f32 %v241_v6, %v258_v22  ;;  %v265_v29 = vsub.f32 %v242_v10, %v251_v21  ;;  %v266_v33 = vsub.f32 %v243_v11, %v258_v22 }
  0x2d   : > { %v267_v30 = vmul.f32 1.442695, %v259_v23  ;;  %v269_v31 = vmul.f32 1.442695, %v260_v24  ;;  %v271_v32 = vmul.f32 1.442695, %v261_v25 }
  0x2e   : > { %v273_v34 = vmul.f32 1.442695, %v262_v26  ;;  %v275_v35 = vmul.f32 1.442695, %v263_v27  ;;  %v277_v36 = vmul.f32 1.442695, %v264_v28 }
  0x2f   : > { %724 = vpow2.f32 %v267_v30  ;;  %v279_v37 = vmul.f32 1.442695, %v265_v29  ;;  %v281_v38 = vmul.f32 1.442695, %v266_v33  ;;  %v650_v1 = vsel %vm336_vm3, 1.0, %v862_v0 }
  0x30   : > { %726 = vpow2.f32 %v269_v31  ;;  %v651_v2 = vsel %vm337_vm4, 1.0, %v862_v0  ;;  %v652_v3 = vsel %vm338_vm5, 1.0, %v862_v0  ;;  %v653_v4 = vsel %vm339_vm6, 1.0, %v862_v0 }
  0x31   : > { %728 = vpow2.f32 %v271_v32  ;;  %v654_v5 = vsel %vm340_vm7, 1.0, %v862_v0  ;;  %v655_v6 = vsel %vm341_vm9, 1.0, %v862_v0  ;;  %v656_v7 = vsel %vm342_vm10, 1.0, %v862_v0 }
  0x32   : > { %730 = vpow2.f32 %v273_v34  ;;  %v467_v10 = vsel %vm244_vm1, %v650_v1, 0.0  ;;  %v475_v11 = vsel %vm244_vm1, %v651_v2, 0.0  ;;  %v476_v12 = vsel %vm244_vm1, %v652_v3, 0.0 }
  0x33   : > { %732 = vpow2.f32 %v275_v35  ;;  %v468_v14 = vadd.f32 %v467_v10, %v466_v8  ;;  %v477_v15 = vadd.f32 %v476_v12, %v475_v11  ;;  %v484_v16 = vsel %vm244_vm1, %v653_v4, 0.0 }
  0x34   : > { %734 = vpow2.f32 %v277_v36  ;;  %v485_v18 = vsel %vm244_vm1, %v654_v5, 0.0  ;;  %v493_v0 = vsel %vm244_vm1, %v655_v6, 0.0  ;;  %v494_v19 = vsel %vm244_vm1, %v656_v7, 0.0 }
  0x35   : > { %v981_v39 = vpop.eup %724  ;;  %736 = vpow2.f32 %v279_v37  ;;  %v469_v23 = vrot.slane %v468_v14, 4  ;;  %v478_v24 = vrot.slane %v477_v15, 4  ;;  %v486_v27 = vadd.f32 %v485_v18, %v484_v16 }
  0x36   : > { %v983_v40 = vpop.eup %726  ;;  %738 = vpow2.f32 %v281_v38  ;;  %v283_v41 = vsel %vm244_vm1, %v981_v39, 0.0  ;;  %v495_v28 = vadd.f32 %v494_v19, %v493_v0 }
  0x37   : > { %v987_v42 = vpop.eup %728  ;;  %v290_v43 = vsel %vm244_vm1, %v983_v40, 0.0  ;;  %v470_v30 = vadd.f32 %v469_v23, %v468_v14  ;;  %v479_v31 = vadd.f32 %v478_v24, %v477_v15  ;;  %v487_v33 = vrot.slane %v486_v27, 4 }
  0x38   : > { %v991_v44 = vpop.eup %730  ;;  %v284_v45 = vsel %vm244_vm1, %v987_v42, 0.0  ;;  %v496_v34 = vrot.slane %v495_v28, 4 }
  0x39   : > { %v995_v46 = vpop.eup %732  ;;  %v285_v47 = vadd.f32 %v284_v45, %v283_v41  ;;  %v291_v48 = vsel %vm244_vm1, %v991_v44, 0.0  ;;  %v471_v37 = vrot.slane %v470_v30, 2  ;;  %v480_v38 = vrot.slane %v479_v31, 2 }
  0x3a   : > { %v999_v49 = vpop.eup %734  ;;  %v286_v50 = vsel %vm244_vm1, %v995_v46, 0.0  ;;  %v292_v51 = vadd.f32 %v291_v48, %v290_v43  ;;  %v497_v48 = vadd.f32 %v496_v34, %v495_v28 }
  0x3b   : > { %v1006_v53 = vpop.eup %736  ;;  %v287_v54 = vadd.f32 %v286_v50, %v285_v47  ;;  %v293_v55 = vsel %vm244_vm1, %v999_v49, 0.0  ;;  %v488_v47 = vadd.f32 %v487_v33, %v486_v27 }
  0x3c   : > { %v1013_v57 = vpop.eup %738  ;;  %v288_v58 = vsel %vm244_vm1, %v1006_v53, 0.0  ;;  %v294_v59 = vadd.f32 %v293_v55, %v292_v51  ;;  %v1081_v55 = vadd.f32 %v471_v37, %v470_v30 }
  0x3d   : > { %v289_v60 = vadd.f32 %v288_v58, %v287_v54  ;;  %v295_v61 = vsel %vm244_vm1, %v1013_v57, 0.0  ;;  %v1083_v58 = vadd.f32 %v480_v38, %v479_v31 }
  0x3e   : > { %v1020_v62 = vadd.f32 %v295_v61, %v294_v59  ;;  %v498_v61 = vrot.slane %v497_v48, 2  ;;  %v473_v1 = vrot.slane %v1081_v55, 1 }
  0x3f   : > { %740 = vrcp.f32 %v289_v60  ;;  %vm302_vm8 = vweird.f32 %v289_v60  ;;  %v306_v9 = vand.u32 2147483647, %v289_v60  ;;  %v308_v13 = vand.u32 2147483648, %v289_v60 }
  0x40   : > { %742 = vrcp.f32 %v1020_v62  ;;  %vm316_vm11 = vweird.f32 %v1020_v62  ;;  %v320_v22 = vand.u32 2147483647, %v1020_v62  ;;  %v322_v26 = vand.u32 2147483648, %v1020_v62 }
  0x41   : > { %vm1066_vm14 = vcmp.eq.f32.partialorder %v306_v9, 8.507059e+37  ;;  %v309_v43 = vor.u32 1.1754944e-38, %v308_v13  ;;  %v1095_v5 = vadd.f32 %v498_v61, %v497_v48 }
  0x42   : > { %v323_v54 = vor.u32 1.1754944e-38, %v322_v26 }
  0x45   : > { %v741_v17 = vpop.eup %740 }
  0x46   : > { %v743_v20 = vpop.eup %742  ;;  %v298_v21 = vmul.f32 %v741_v17, %v289_v60  ;;  %vm303_vm12 = vweird.f32 %v741_v17  ;;  %v489_v60 = vrot.slane %v488_v47, 2 }
  0x47   : > { %v312_v25 = vmul.f32 %v743_v20, %v1020_v62  ;;  %vm317_vm13 = vweird.f32 %v743_v20  ;;  %vm1071_vm15 = vmor %vm302_vm8, %vm303_vm12  ;;  %vm321_vm8 = vcmp.eq.f32.partialorder %v320_v22, 8.507059e+37  ;;  %v482_v62 = vrot.slane %v1083_v58, 1 }
  0x48   : > { %v299_v29 = vsub.f32 1.0, %v298_v21  ;;  %vm1077_vm0 = vmor %vm316_vm11, %vm317_vm13  ;;  %v1093_v4 = vadd.f32 %v489_v60, %v488_v47  ;;  %vm525_vm11 = vcmask 11272   ;;  %vm531_vm12 = vcmask 19472  }
  0x49   : > { %v313_v32 = vsub.f32 1.0, %v312_v25 }
  0x4a   : > { %v300_v35 = vmul.f32 %v741_v17, %v299_v29 }
  0x4b   : > { %v314_v45 = vmul.f32 %v743_v20, %v313_v32 }
  0x4c   : > { %v301_v50 = vadd.f32 %v741_v17, %v300_v35 }
  0x4d   : > { %v315_v59 = vadd.f32 %v743_v20, %v314_v45 }
  0x4e   : > { %v305_v63 = vsel %vm1071_vm15, %v741_v17, %v301_v50 }
  0x4f   : > { %v310_v2 = vsel %vm1066_vm14, %v309_v43, %v305_v63  ;;  %v319_v3 = vsel %vm1077_vm0, %v743_v20, %v315_v59  ;;  %vm408_vm0 = vcmask 1041409  }
  0x50   : > { %v324_v6 = vsel %vm321_vm8, %v323_v54, %v319_v3  ;;  %v325_v7 = vmul.f32 %v981_v39, %v310_v2  ;;  %v327_v8 = vmul.f32 %v987_v42, %v310_v2  ;;  %v329_v9 = vmul.f32 %v995_v46, %v310_v2 }
  0x51   : > { %v326_v10 = vmul.f32 %v983_v40, %v324_v6  ;;  %v328_v11 = vmul.f32 %v991_v44, %v324_v6  ;;  %v330_v12 = vmul.f32 %v999_v49, %v324_v6  ;;  %v331_v13 = vmul.f32 %v1006_v53, %v310_v2 }
  0x52   : > { %v332_v14 = vmul.f32 %v1013_v57, %v324_v6  ;;  %v359_v15 = vsel %vm335_vm2, %v325_v7, 0.0  ;;  %v361_v39 = vsel %vm337_vm4, %v327_v8, 0.0  ;;  %v363_v42 = vsel %vm339_vm6, %v329_v9, 0.0 }
  0x53   : > { %v360_v40 = vsel %vm336_vm3, %v326_v10, 0.0  ;;  %v362_v44 = vsel %vm338_vm5, %v328_v11, 0.0  ;;  %v364_v46 = vsel %vm340_vm7, %v330_v12, 0.0  ;;  %v365_v49 = vsel %vm341_vm9, %v331_v13, 0.0 }
  0x54   : > { %v366_v53 = vsel %vm342_vm10, %v332_v14, 0.0  ;;  %v368_v57 = vsel %vm244_vm1, %v359_v15, 0.0  ;;  %v369_v16 = vsel %vm244_vm1, %v360_v40, 0.0  ;;  %v377_v17 = vsel %vm244_vm1, %v361_v39, 0.0 }
  0x55   : > { %v370_v18 = vadd.f32 %v369_v16, %v368_v57  ;;  %v378_v0 = vsel %vm244_vm1, %v362_v44, 0.0  ;;  %v386_v19 = vsel %vm244_vm1, %v363_v42, 0.0  ;;  %v387_v20 = vsel %vm244_vm1, %v364_v46, 0.0 }
  0x56   : > { %v379_v21 = vadd.f32 %v378_v0, %v377_v17  ;;  %v388_v22 = vadd.f32 %v387_v20, %v386_v19  ;;  %v395_v52 = vsel %vm244_vm1, %v365_v49, 0.0  ;;  %v396_v56 = vsel %vm244_vm1, %v366_v53, 0.0  ;;  %v367_v19 = vld [vmem:[#allocation2] sm:$0xf] }
  0x57   : > { %v371_v23 = vrot.slane %v370_v18, 4  ;;  %v397_v24 = vadd.f32 %v396_v56, %v395_v52  ;;  %v419_v25 = vsel %vm244_vm1, %v325_v7, 0.0  ;;  %v420_v26 = vsel %vm244_vm1, %v326_v10, 0.0 }
  0x58   : > { %v380_v27 = vrot.slane %v379_v21, 4  ;;  %v389_v28 = vrot.slane %v388_v22, 4  ;;  %v421_v29 = vadd.f32 %v420_v26, %v419_v25  ;;  %v428_v30 = vsel %vm244_vm1, %v327_v8, 0.0 }
  0x59   : > { %v372_v31 = vadd.f32 %v371_v23, %v370_v18  ;;  %v398_v32 = vrot.slane %v397_v24, 4  ;;  %v429_v33 = vsel %vm244_vm1, %v328_v11, 0.0  ;;  %v437_v34 = vsel %vm244_vm1, %v329_v9, 0.0 }
  0x5a   : > { %v381_v35 = vadd.f32 %v380_v27, %v379_v21  ;;  %v390_v36 = vadd.f32 %v389_v28, %v388_v22  ;;  %vm410_vm2 = vcmask 1042434   ;;  %v422_v37 = vrot.slane %v421_v29, 4 }
  0x5b   : > { %v430_v38 = vadd.f32 %v429_v33, %v428_v30  ;;  %v373_v41 = vrot.slane %v372_v31, 2  ;;  %v399_v43 = vadd.f32 %v398_v32, %v397_v24  ;;  %vm412_vm3 = vcmask 1043459  }
  0x5c   : > { %v438_v45 = vsel %vm244_vm1, %v330_v12, 0.0  ;;  %v446_v47 = vsel %vm244_vm1, %v331_v13, 0.0  ;;  %v382_v48 = vrot.slane %v381_v35, 2  ;;  %v391_v50 = vrot.slane %v390_v36, 2 }
  0x5d   : > { %v423_v51 = vadd.f32 %v422_v37, %v421_v29  ;;  %v431_v54 = vrot.slane %v430_v38, 4  ;;  %v374_v59 = vadd.f32 %v373_v41, %v372_v31  ;;  %v400_v60 = vrot.slane %v399_v43, 2  ;;  %v418_v37 = vld [vmem:[#allocation3] sm:$0xf] }
  0x5e   : > { %v439_v61 = vadd.f32 %v438_v45, %v437_v34  ;;  %v447_v63 = vsel %vm244_vm1, %v332_v14, 0.0  ;;  %v383_v2 = vadd.f32 %v382_v48, %v381_v35  ;;  %v392_v3 = vadd.f32 %v391_v50, %v390_v36 }
  0x5f   : > { %v424_v6 = vrot.slane %v423_v51, 2  ;;  %v432_v7 = vadd.f32 %v431_v54, %v430_v38  ;;  %v375_v8 = vrot.slane %v374_v59, 1  ;;  %v401_v9 = vadd.f32 %v400_v60, %v399_v43 }
  0x60   : > { %v440_v10 = vrot.slane %v439_v61, 4  ;;  %v448_v11 = vadd.f32 %v447_v63, %v446_v47  ;;  %v384_v12 = vrot.slane %v383_v2, 1  ;;  %v393_v15 = vrot.slane %v392_v3, 1 }
  0x61   : > { %v425_v13 = vadd.f32 %v424_v6, %v423_v51  ;;  %v433_v39 = vrot.slane %v432_v7, 2  ;;  %v376_v42 = vadd.f32 %v375_v8, %v374_v59  ;;  %v402_v40 = vrot.slane %v401_v9, 1 }
  0x62   : > { %v441_v44 = vadd.f32 %v440_v10, %v439_v61  ;;  %v449_v46 = vrot.slane %v448_v11, 4  ;;  %v385_v49 = vadd.f32 %v384_v12, %v383_v2  ;;  %v394_v53 = vadd.f32 %v393_v15, %v392_v3 }
  0x63   : > { %v426_v57 = vrot.slane %v425_v13, 1  ;;  %v434_v14 = vadd.f32 %v433_v39, %v432_v7  ;;  %v403_v16 = vadd.f32 %v402_v40, %v401_v9  ;;  %v474_v0 = vadd.f32 %v473_v1, %v1081_v55 }
  0x64   : > { %v442_v17 = vrot.slane %v441_v44, 2  ;;  %v450_v18 = vadd.f32 %v449_v46, %v448_v11  ;;  %v409_v20 = vsel %vm408_vm0, %v385_v49, %v376_v42  ;;  %v483_v52 = vadd.f32 %v482_v62, %v1083_v58  ;;  %v465_v62 = vld [vmem:[#allocation4] sm:$0xf] }
  0x65   : > { %v427_v21 = vadd.f32 %v426_v57, %v425_v13  ;;  %v435_v22 = vrot.slane %v434_v14, 1  ;;  %v411_v56 = vsel %vm410_vm2, %v394_v53, %v409_v20  ;;  %v491_v25 = vrot.slane %v1093_v4, 1 }
  0x66   : > { %v443_v23 = vadd.f32 %v442_v17, %v441_v44  ;;  %v451_v24 = vrot.slane %v450_v18, 2  ;;  %v413_v26 = vsel %vm412_vm3, %v403_v16, %v411_v56  ;;  %v500_v55 = vrot.slane %v1095_v5, 1 }
  0x67   : > { %v436_v27 = vadd.f32 %v435_v22, %v434_v14  ;;  %v506_v1 = vsel %vm408_vm0, %v483_v52, %v474_v0  ;;  %v415_v28 = vadd.f32 %v413_v26, %v367_v19  ;;  %v492_v31 = vadd.f32 %v491_v25, %v1093_v4 }
  0x68   : > { %v444_v29 = vrot.slane %v443_v23, 1  ;;  %v452_v30 = vadd.f32 %v451_v24, %v450_v18  ;;  %v501_v32 = vadd.f32 %v500_v55, %v1095_v5  ;;  %vm1198_vm1 = vcmask 125952  }
  0x69   : > { %v459_v58 = vsel %vm408_vm0, %v436_v27, %v427_v21  ;;  %417 = vst.msk [vmem:[#allocation2] sm:$0xf] %vm1198_vm1, %v415_v28  ;;  %v507_v35 = vsel %vm410_vm2, %v492_v31, %v506_v1  ;;  %vm1199_vm4 = vmmov %vm1198_vm1  ;;  %vm519_vm10 = vcmask 3072  }
  0x6a   : > { %v445_v33 = vadd.f32 %v444_v29, %v443_v23  ;;  %v453_v34 = vrot.slane %v452_v30, 1  ;;  %v508_v36 = vsel %vm412_vm3, %v501_v32, %v507_v35  ;;  %vm1200_vm5 = vmmov %vm1198_vm1 }
  0x6b   : > { %v510_v4 = vadd.f32 %v508_v36, %v465_v62  ;;  %vm1201_vm6 = vmmov %vm1198_vm1 }
  0x6c   : > { %v454_v38 = vadd.f32 %v453_v34, %v452_v30  ;;  %v460_v41 = vsel %vm410_vm2, %v445_v33, %v459_v58  ;;  %vm1202_vm7 = vmmov %vm1198_vm1 }
  0x6d   : > { %511 = vst.msk [vmem:[#allocation4] sm:$0xf] %vm1199_vm4, %v510_v4  ;;  %vm1203_vm9 = vmmov %vm1198_vm1 }
  0x6e   : > { %v461_v43 = vsel %vm412_vm3, %v454_v38, %v460_v41 }
  0x6f   : > { %v463_v5 = vadd.f32 %v461_v43, %v418_v37 }
  0x70   : > { %v515_v45 = vld [vmem:[#allocation2] sm:$0xf] }
  0x71   : > { %464 = vst.msk [vmem:[#allocation3] sm:$0xf] %vm1200_vm5, %v463_v5  ;;  %v516_v47 = vsel %vm1201_vm6, %v515_v45, 0.0 }
  0x72   : > { %517 = vadd.xlane.f32.xlu0 %v516_v47 }
  0x74   : > { %v527_v48 = vld [vmem:[#allocation4] sm:$0xf] }
  0x75   : > { %v528_v50 = vsel %vm1202_vm7, %v527_v48, 0.0 }
  0x76   : > { %529 = vadd.xlane.f32.xlu1 %v528_v50 }
  0x78   : > { %v521_v51 = vld [vmem:[#allocation3] sm:$0xf] }
  0x79   : > { %v522_v54 = vsel %vm1203_vm9, %v521_v51, 0.0 }
  0x7a   : > { %523 = vadd.xlane.f32.xlu0 %v522_v54 }
  0xe5   : > { %v518_v59 = vpop.xlane.xlu0 %517 }
  0xe6   : > { %520 = vst.msk [vmem:[%s227_s5] sm:$0xf] %vm519_vm10, %v518_v59 }
  0xe9   : > { %v530_v60 = vpop.xlane.xlu1 %529 }
  0xed   : > { %v524_v61 = vpop.xlane.xlu0 %523 }
  0xee   : > { %526 = vst.msk [vmem:[%s227_s5] sm:$0xf] %vm525_vm11, %v524_v61 }
  0xef   : > { %532 = vst.msk [vmem:[%s227_s5] sm:$0xf] %vm531_vm12, %v530_v60 }
  0xf0 PF: > { %s18_s14 = sadd.s32 1, %s858_s14   ;;  %s1204_s9 = smov %s842_s10 }
  0xf1   : > { %p15_p0 = scmp.ge.s32.totalorder %s18_s14, 4   ;;  %s1205_s10 = smov %s846_s11 }
  0xf2   : > { %s1206_s11 = smov %s927_s21  ;;  %s1207_s12 = smov %s854_s13 }
  0xf3   : > { %s1208_s13 = smov %s1210_s16  ;;  %17 = sbr.rel (!%p15_p0) target bundleno = 6 (0x6), region = 89 }
  0xf8   :  { %552 = vsyncpa [#allocation6], 1 }
  0xf9   :  { %554 = vsyncpa [#allocation6 + $0x1], 1 }
  0xfa   :  { %555 = vsyncpa [#allocation8], 1 }
  0xfb   :  { %557 = vsyncpa [#allocation8 + $0x1], 1 }

</bundles_post_ra>
